<compile_context>
chip_gen: v6e
topology: v6e:2x2x1
jax: 0.10.0
libtpu: 0.0.40
codegen_flags: <defaults>
</compile_context>

<pallas_src>
import functools

import jax
import jax.numpy as jnp
from jax.experimental import pallas as pl
from jax.experimental.pallas import tpu as pltpu


_K_F32_TEMPS = 6  # ~(TB, TC)-sized f32 temporaries live in-kernel (upcasts, exps, selects)


def _fixmatch_kernel(ls_ref, lw_ref, part_ref,
                     w_max, w_den, s_sel, s_max, s_den, *,
                     inv_temperature, inv_threshold, n_rows, n_cols,
                     tile_b, tile_c, mask_rows_needed, mask_cols_needed):
    i = pl.program_id(0)          # batch tile (parallel)
    j = pl.program_id(1)          # class tile (reduction axis, innermost)
    nc = pl.num_programs(1)

    @pl.when(j == 0)
    def _init():
        w_max[...] = jnp.full_like(w_max, -jnp.inf)
        w_den[...] = jnp.zeros_like(w_den)
        s_sel[...] = jnp.zeros_like(s_sel)
        s_max[...] = jnp.full_like(s_max, -jnp.inf)
        s_den[...] = jnp.zeros_like(s_den)

    # (1, TC) class-index iota broadcasts against (TB, 1)/(TB, TC) operands,
    # avoiding a (TB, TC) int32 temporary.
    col = jax.lax.broadcasted_iota(jnp.int32, (1, tile_c), 1)

    ls = ls_ref[...].astype(jnp.float32)                      # (TB, TC) strong
    lw = lw_ref[...].astype(jnp.float32) * inv_temperature    # (TB, TC) weak / T
    if mask_cols_needed:
        # Ragged class axis: the trailing block reads garbage columns; kill them.
        col_ok = (j * tile_c + col) < n_cols                  # (1, TC)
        ls = jnp.where(col_ok, ls, -jnp.inf)
        lw = jnp.where(col_ok, lw, -jnp.inf)

    # ---- weak branch: online max / softmax denominator / pseudo-label -------
    m_w_t = jnp.max(lw, axis=-1, keepdims=True)               # (TB, 1)
    den_w_t = jnp.sum(jnp.exp(lw - m_w_t), axis=-1, keepdims=True)
    # first index achieving the tile-local max (torch first-max tie-breaking)
    arg_t = jnp.min(jnp.where(lw == m_w_t, col, tile_c), axis=-1, keepdims=True)
    # strong logit at the tile-local pseudo-label
    sel_t = jnp.sum(jnp.where(col == arg_t, ls, 0.0), axis=-1, keepdims=True)

    improved = m_w_t > w_max[...]        # strict >: earlier class tiles win ties
    new_w_max = jnp.maximum(w_max[...], m_w_t)
    w_den[...] = (w_den[...] * jnp.exp(w_max[...] - new_w_max)
                  + den_w_t * jnp.exp(m_w_t - new_w_max))
    w_max[...] = new_w_max
    s_sel[...] = jnp.where(improved, sel_t, s_sel[...])

    # ---- strong branch: online logsumexp -------------------------------------
    m_s_t = jnp.max(ls, axis=-1, keepdims=True)
    den_s_t = jnp.sum(jnp.exp(ls - m_s_t), axis=-1, keepdims=True)
    new_s_max = jnp.maximum(s_max[...], m_s_t)
    s_den[...] = (s_den[...] * jnp.exp(s_max[...] - new_s_max)
                  + den_s_t * jnp.exp(m_s_t - new_s_max))
    s_max[...] = new_s_max

    # ---- finalize on the last class tile -------------------------------------
    @pl.when(j == nc - 1)
    def _finalize():
        # max softmax prob == 1/w_den, so (1/w_den > thr) <=> (w_den < 1/thr).
        # Equivalent to the torch test up to ~1 ulp for a row sitting exactly
        # at max_prob == threshold (measure-zero in practice).
        mask = (w_den[...] < inv_threshold).astype(jnp.float32)   # (TB, 1)
        ce = (jnp.log(s_den[...]) + s_max[...]) - s_sel[...]      # (TB, 1)
        loss_rows = ce * mask
        mask_rows = mask
        if mask_rows_needed:
            row = jax.lax.broadcasted_iota(jnp.int32, (tile_b, 1), 0)
            row_ok = (i * tile_b + row) < n_rows
            # jnp.where (not multiply) so NaN garbage in padded rows never leaks.
            loss_rows = jnp.where(row_ok, loss_rows, 0.0)
            mask_rows = jnp.where(row_ok, mask_rows, 0.0)
        part_ref[0, 0] = jnp.sum(loss_rows)
        part_ref[1, 0] = jnp.sum(mask_rows)


def _round_up(x, m):
    return (x + m - 1) // m * m


def _vmem_limit_bytes():
    """Generation-aware scoped-VMEM ceiling (v7x: 64 MiB/TC, v5e/v6e: 128 MiB)."""
    try:
        cap = int(pltpu.get_tpu_info().vmem_capacity_bytes)
    except Exception:               # fall back to the smallest (v7x-like) VMEM
        cap = 64 * 1024 * 1024
    return (48 if cap <= 64 * 1024 * 1024 else 64) * 1024 * 1024


def fixmatch_cross_entropy(logits_s, logits_w, *, temperature=1.0,
                           threshold=0.95, reduction="mean",
                           tile_b=None, tile_c=None):
    """Returns (loss, mu_mask) matching FixMatchCrossEntropy.forward / .μmask.

    Inputs may be f32 or bf16 (bf16 halves HBM traffic; math stays f32).
    """
    assert logits_s.shape == logits_w.shape and logits_s.ndim == 2
    n, c = logits_s.shape

    itemsize = max(jnp.dtype(logits_s.dtype).itemsize,
                   jnp.dtype(logits_w.dtype).itemsize)
    sub = max(8, 32 // itemsize)        # sublane packing: f32->8, bf16->16, i8->32

    vmem_limit = _vmem_limit_bytes()
    budget = (vmem_limit * 3) // 4      # headroom for pipeline / compiler slack
    # Bytes per (row, class) element: double-buffered DMA of both inputs at the
    # *input* itemsize, plus the in-kernel f32 working set (upcasts, exps,
    # selects) — not just the input itemsize.
    per_elem = 2 * 2 * itemsize + _K_F32_TEMPS * 4

    auto_tile_b = tile_b is None

    if tile_c is None:
        if c <= 256 or budget // (per_elem * c) >= 256:
            tile_c = c                   # single class tile (common case)
        else:
            # Split the class axis into 128-multiples so >= 256 rows still fit.
            tile_c = max(128, (budget // (per_elem * 256)) // 128 * 128)
            tile_c = min(tile_c, c)
    assert tile_c == c or tile_c % 128 == 0, "tile_c must be C or a 128-multiple"

    if tile_b is None:
        tile_b = budget // (per_elem * tile_c)
        tile_b = max(sub, min(tile_b, 4096))    # big steps amortize ~0.35us/step
    tile_b = max(sub, (tile_b // sub) * sub)
    tile_b = min(tile_b, _round_up(n, sub))

    num_b_tiles = pl.cdiv(n, tile_b)
    if auto_tile_b and num_b_tiles % 2 == 1 and n >= 2 * sub:
        # Prefer an even batch-tile count so the "parallel" axis splits evenly
        # across v7x's two TensorCores (harmless on single-TC v5e/v6e).
        cand = max(sub, _round_up(pl.cdiv(n, num_b_tiles + 1), sub))
        if pl.cdiv(n, cand) % 2 == 0:
            tile_b = cand
            num_b_tiles = pl.cdiv(n, cand)
    num_c_tiles = pl.cdiv(c, tile_c)

    inv_threshold = (1.0 / float(threshold)) if threshold > 0 else float("inf")
    inv_temperature = 1.0 / float(temperature)

    kernel = functools.partial(
        _fixmatch_kernel,
        inv_temperature=inv_temperature, inv_threshold=inv_threshold,
        n_rows=n, n_cols=c, tile_b=tile_b, tile_c=tile_c,
        mask_rows_needed=(n % tile_b) != 0,
        mask_cols_needed=(c % tile_c) != 0)

    # Packed per-batch-tile partials [loss_sum; mask_sum]: one tiny SMEM output
    # block per tile instead of two.
    part_spec = pl.BlockSpec((2, 1), lambda i, j: (0, i),
                             memory_space=pltpu.MemorySpace.SMEM)

    cost = pl.CostEstimate(
        flops=12 * n * c,
        transcendentals=2 * n * c,
        bytes_accessed=int(2 * n * c * itemsize + 8 * num_b_tiles))

    partials = pl.pallas_call(
        kernel,
        out_shape=jax.ShapeDtypeStruct((2, num_b_tiles), jnp.float32),
        grid_spec=pltpu.PrefetchScalarGridSpec(
            num_scalar_prefetch=0,
            grid=(num_b_tiles, num_c_tiles),
            in_specs=[pl.BlockSpec((tile_b, tile_c), lambda i, j: (i, j)),
                      pl.BlockSpec((tile_b, tile_c), lambda i, j: (i, j))],
            out_specs=part_spec,
            scratch_shapes=[pltpu.VMEM((tile_b, 1), jnp.float32)] * 5),
        compiler_params=pltpu.CompilerParams(
            dimension_semantics=("parallel", "arbitrary"),
            vmem_limit_bytes=vmem_limit),
        cost_estimate=cost,
    )(logits_s, logits_w)

    loss_sum = jnp.sum(partials[0])
    mask_sum = jnp.sum(partials[1])
    mu_mask = mask_sum / n

    if reduction == "mean":
        return loss_sum / n, mu_mask
    if reduction == "sum":
        return loss_sum, mu_mask
    # TODO(synk): reduction='none' (per-example loss vector) would need an
    # additional (tile_b, 1) per-row output BlockSpec; not emitted here.
    raise NotImplementedError("only 'mean' and 'sum' reductions implemented")


def _reference(logits_s, logits_w, temperature=1.0, threshold=0.95):
    probs = jax.nn.softmax(logits_w / temperature, axis=-1)
    max_probs = jnp.max(probs, axis=-1)
    targets = jnp.argmax(probs, axis=-1)
    masks = (max_probs > threshold).astype(jnp.float32)
    lse = jax.scipy.special.logsumexp(logits_s, axis=-1)
    ce = lse - jnp.take_along_axis(logits_s, targets[:, None], axis=-1)[:, 0]
    loss = ce * masks
    return jnp.mean(loss), jnp.mean(masks)


if __name__ == "__main__":
    key = jax.random.PRNGKey(0)
    k1, k2, k3, k4 = jax.random.split(key, 4)

    # --- default path: single class tile, ragged batch (N % 8 != 0) ----------
    N, C = 12, 40
    logits_s = jax.random.normal(k1, (N, C), dtype=jnp.float32)
    # scale weak logits so some rows are confident (> 0.95 max prob)
    logits_w = 6.0 * jax.random.normal(k2, (N, C), dtype=jnp.float32)

    loss, mu_mask = fixmatch_cross_entropy(logits_s, logits_w,
                                           temperature=1.0, threshold=0.95,
                                           reduction="mean")
    loss, mu_mask = jax.block_until_ready((loss, mu_mask))
    ref_loss, ref_mu = _reference(logits_s, logits_w)
    assert jnp.allclose(loss, ref_loss, atol=1e-5, rtol=1e-5), (loss, ref_loss)
    assert jnp.allclose(mu_mask, ref_mu, atol=1e-6), (mu_mask, ref_mu)

    # --- bf16 ingestion path (upcast in-kernel; halves HBM bytes at scale) ---
    loss_bf, mu_bf = fixmatch_cross_entropy(logits_s.astype(jnp.bfloat16),
                                            logits_w.astype(jnp.bfloat16))
    jax.block_until_ready((loss_bf, mu_bf))

    # --- forced class-axis split: online logsumexp/argmax merge, ragged C ----
    N2, C2 = 24, 300
    ls2 = jax.random.normal(k3, (N2, C2), dtype=jnp.float32)
    lw2 = 8.0 * jax.random.normal(k4, (N2, C2), dtype=jnp.float32)
    loss2, mu2 = fixmatch_cross_entropy(ls2, lw2, tile_b=8, tile_c=128)
    loss2, mu2 = jax.block_until_ready((loss2, mu2))
    r_loss2, r_mu2 = _reference(ls2, lw2)
    assert jnp.allclose(loss2, r_loss2, atol=1e-4, rtol=1e-4), (loss2, r_loss2)
    assert jnp.allclose(mu2, r_mu2, atol=1e-6), (mu2, r_mu2)

    print("KERNEL_OK")
</pallas_src>

<mosaic_0001>
module attributes {stable_mosaic.version = 11 : i64} {
  func.func @_fixmatch_kernel(%arg0: i32, %arg1: i32, %arg2: memref<16x40xf32, #tpu.memory_space<vmem>>, %arg3: memref<16x40xf32, #tpu.memory_space<vmem>>, %arg4: memref<2x1xf32, #tpu.memory_space<smem>>, %arg5: memref<16x1xf32, #tpu.memory_space<vmem>>, %arg6: memref<16x1xf32, #tpu.memory_space<vmem>>, %arg7: memref<16x1xf32, #tpu.memory_space<vmem>>, %arg8: memref<16x1xf32, #tpu.memory_space<vmem>>, %arg9: memref<16x1xf32, #tpu.memory_space<vmem>>) attributes {dimension_semantics = [#tpu.dimension_semantics<parallel>, #tpu.dimension_semantics<arbitrary>], iteration_bounds = array<i64: 1, 1>, scalar_prefetch = 0 : i64, scratch_operands = 5 : i64, tpu.core_type = #tpu.core_type<tc>, window_params = [{transform_indices = @transform_0, window_bounds = array<i64: 16, 40>}, {transform_indices = @transform_1, window_bounds = array<i64: 16, 40>}, {transform_indices = @transform_2, window_bounds = array<i64: 2, 1>}]} {
    %c0_i32 = arith.constant 0 : i32
    %0 = arith.cmpi eq, %arg1, %c0_i32 : i32
    %1 = arith.extui %0 : i1 to i32
    %c0_i32_0 = arith.constant 0 : i32
    %2 = arith.cmpi ne, %1, %c0_i32_0 : i32
    scf.if %2 {
      %cst_39 = arith.constant 0xFF800000 : f32
      %71 = vector.broadcast %cst_39 : f32 to vector<16x1xf32>
      %c0_40 = arith.constant 0 : index
      %c0_41 = arith.constant 0 : index
      %72 = vector.load %arg5[%c0_40, %c0_41] : memref<16x1xf32, #tpu.memory_space<vmem>>, vector<16x1xf32>
      tpu.vector_store %arg5[%c0_40, %c0_41], %71 {strides = array<i32>} : memref<16x1xf32, #tpu.memory_space<vmem>>, vector<16x1xf32>,
      %cst_42 = arith.constant 0.000000e+00 : f32
      %73 = vector.broadcast %cst_42 : f32 to vector<16x1xf32>
      %c0_43 = arith.constant 0 : index
      %c0_44 = arith.constant 0 : index
      %74 = vector.load %arg6[%c0_43, %c0_44] : memref<16x1xf32, #tpu.memory_space<vmem>>, vector<16x1xf32>
      tpu.vector_store %arg6[%c0_43, %c0_44], %73 {strides = array<i32>} : memref<16x1xf32, #tpu.memory_space<vmem>>, vector<16x1xf32>,
      %cst_45 = arith.constant 0.000000e+00 : f32
      %75 = vector.broadcast %cst_45 : f32 to vector<16x1xf32>
      %c0_46 = arith.constant 0 : index
      %c0_47 = arith.constant 0 : index
      %76 = vector.load %arg7[%c0_46, %c0_47] : memref<16x1xf32, #tpu.memory_space<vmem>>, vector<16x1xf32>
      tpu.vector_store %arg7[%c0_46, %c0_47], %75 {strides = array<i32>} : memref<16x1xf32, #tpu.memory_space<vmem>>, vector<16x1xf32>,
      %cst_48 = arith.constant 0xFF800000 : f32
      %77 = vector.broadcast %cst_48 : f32 to vector<16x1xf32>
      %c0_49 = arith.constant 0 : index
      %c0_50 = arith.constant 0 : index
      %78 = vector.load %arg8[%c0_49, %c0_50] : memref<16x1xf32, #tpu.memory_space<vmem>>, vector<16x1xf32>
      tpu.vector_store %arg8[%c0_49, %c0_50], %77 {strides = array<i32>} : memref<16x1xf32, #tpu.memory_space<vmem>>, vector<16x1xf32>,
      %cst_51 = arith.constant 0.000000e+00 : f32
      %79 = vector.broadcast %cst_51 : f32 to vector<16x1xf32>
      %c0_52 = arith.constant 0 : index
      %c0_53 = arith.constant 0 : index
      %80 = vector.load %arg9[%c0_52, %c0_53] : memref<16x1xf32, #tpu.memory_space<vmem>>, vector<16x1xf32>
      tpu.vector_store %arg9[%c0_52, %c0_53], %79 {strides = array<i32>} : memref<16x1xf32, #tpu.memory_space<vmem>>, vector<16x1xf32>,
    } else {
    }
    %3 = tpu.iota {dimensions = array<i32: 1>} : vector<1x40xi32>
    %c0 = arith.constant 0 : index
    %c0_1 = arith.constant 0 : index
    %4 = vector.load %arg2[%c0, %c0_1] : memref<16x40xf32, #tpu.memory_space<vmem>>, vector<16x40xf32>
    %c0_2 = arith.constant 0 : index
    %c0_3 = arith.constant 0 : index
    %5 = vector.load %arg3[%c0_2, %c0_3] : memref<16x40xf32, #tpu.memory_space<vmem>>, vector<16x40xf32>
    %cst = arith.constant 1.000000e+00 : f32
    %6 = vector.broadcast %cst : f32 to vector<16x40xf32>
    %7 = arith.mulf %5, %6 : vector<16x40xf32>
    %cst_4 = arith.constant dense<0xFF800000> : vector<16xf32>
    %8 = vector.multi_reduction <maximumf>, %7, %cst_4 [1] : vector<16x40xf32> to vector<16xf32>
    %9 = vector.shape_cast %8 : vector<16xf32> to vector<16x1xf32>
    %10 = vector.broadcast %9 : vector<16x1xf32> to vector<16x40xf32>
    %11 = arith.subf %7, %10 : vector<16x40xf32>
    %12 = math.exp %11 : vector<16x40xf32>
    %cst_5 = arith.constant dense<0.000000e+00> : vector<16xf32>
    %13 = vector.multi_reduction <add>, %12, %cst_5 [1] : vector<16x40xf32> to vector<16xf32>
    %14 = vector.shape_cast %13 : vector<16xf32> to vector<16x1xf32>
    %15 = vector.broadcast %9 : vector<16x1xf32> to vector<16x40xf32>
    %16 = arith.cmpf oeq, %7, %15 : vector<16x40xf32>
    %c40_i32 = arith.constant 40 : i32
    %17 = vector.shape_cast %3 : vector<1x40xi32> to vector<1x40xi32>
    %18 = vector.broadcast %17 : vector<1x40xi32> to vector<16x40xi32>
    %19 = vector.broadcast %c40_i32 : i32 to vector<16x40xi32>
    %20 = arith.select %16, %18, %19 : vector<16x40xi1>, vector<16x40xi32>
    %cst_6 = arith.constant dense<2147483647> : vector<16xi32>
    %21 = vector.multi_reduction <minsi>, %20, %cst_6 [1] : vector<16x40xi32> to vector<16xi32>
    %22 = vector.shape_cast %21 : vector<16xi32> to vector<16x1xi32>
    %23 = vector.broadcast %3 : vector<1x40xi32> to vector<16x40xi32>
    %24 = vector.broadcast %22 : vector<16x1xi32> to vector<16x40xi32>
    %25 = arith.cmpi eq, %23, %24 : vector<16x40xi32>
    %cst_7 = arith.constant 0.000000e+00 : f32
    %26 = vector.broadcast %cst_7 : f32 to vector<16x40xf32>
    %27 = arith.select %25, %4, %26 : vector<16x40xi1>, vector<16x40xf32>
    %cst_8 = arith.constant dense<0.000000e+00> : vector<16xf32>
    %28 = vector.multi_reduction <add>, %27, %cst_8 [1] : vector<16x40xf32> to vector<16xf32>
    %29 = vector.shape_cast %28 : vector<16xf32> to vector<16x1xf32>
    %c0_9 = arith.constant 0 : index
    %c0_10 = arith.constant 0 : index
    %30 = vector.load %arg5[%c0_9, %c0_10] : memref<16x1xf32, #tpu.memory_space<vmem>>, vector<16x1xf32>
    %31 = arith.cmpf ogt, %9, %30 : vector<16x1xf32>
    %c0_11 = arith.constant 0 : index
    %c0_12 = arith.constant 0 : index
    %32 = vector.load %arg5[%c0_11, %c0_12] : memref<16x1xf32, #tpu.memory_space<vmem>>, vector<16x1xf32>
    %33 = arith.maximumf %32, %9 : vector<16x1xf32>
    %c0_13 = arith.constant 0 : index
    %c0_14 = arith.constant 0 : index
    %34 = vector.load %arg6[%c0_13, %c0_14] : memref<16x1xf32, #tpu.memory_space<vmem>>, vector<16x1xf32>
    %c0_15 = arith.constant 0 : index
    %c0_16 = arith.constant 0 : index
    %35 = vector.load %arg5[%c0_15, %c0_16] : memref<16x1xf32, #tpu.memory_space<vmem>>, vector<16x1xf32>
    %36 = arith.subf %35, %33 : vector<16x1xf32>
    %37 = math.exp %36 : vector<16x1xf32>
    %38 = arith.mulf %34, %37 : vector<16x1xf32>
    %39 = arith.subf %9, %33 : vector<16x1xf32>
    %40 = math.exp %39 : vector<16x1xf32>
    %41 = arith.mulf %14, %40 : vector<16x1xf32>
    %42 = arith.addf %38, %41 : vector<16x1xf32>
    %c0_17 = arith.constant 0 : index
    %c0_18 = arith.constant 0 : index
    %43 = vector.load %arg6[%c0_17, %c0_18] : memref<16x1xf32, #tpu.memory_space<vmem>>, vector<16x1xf32>
    tpu.vector_store %arg6[%c0_17, %c0_18], %42 {strides = array<i32>} : memref<16x1xf32, #tpu.memory_space<vmem>>, vector<16x1xf32>,
    %c0_19 = arith.constant 0 : index
    %c0_20 = arith.constant 0 : index
    %44 = vector.load %arg5[%c0_19, %c0_20] : memref<16x1xf32, #tpu.memory_space<vmem>>, vector<16x1xf32>
    tpu.vector_store %arg5[%c0_19, %c0_20], %33 {strides = array<i32>} : memref<16x1xf32, #tpu.memory_space<vmem>>, vector<16x1xf32>,
    %c0_21 = arith.constant 0 : index
    %c0_22 = arith.constant 0 : index
    %45 = vector.load %arg7[%c0_21, %c0_22] : memref<16x1xf32, #tpu.memory_space<vmem>>, vector<16x1xf32>
    %46 = arith.select %31, %29, %45 : vector<16x1xi1>, vector<16x1xf32>
    %c0_23 = arith.constant 0 : index
    %c0_24 = arith.constant 0 : index
    %47 = vector.load %arg7[%c0_23, %c0_24] : memref<16x1xf32, #tpu.memory_space<vmem>>, vector<16x1xf32>
    tpu.vector_store %arg7[%c0_23, %c0_24], %46 {strides = array<i32>} : memref<16x1xf32, #tpu.memory_space<vmem>>, vector<16x1xf32>,
    %cst_25 = arith.constant dense<0xFF800000> : vector<16xf32>
    %48 = vector.multi_reduction <maximumf>, %4, %cst_25 [1] : vector<16x40xf32> to vector<16xf32>
    %49 = vector.shape_cast %48 : vector<16xf32> to vector<16x1xf32>
    %50 = vector.broadcast %49 : vector<16x1xf32> to vector<16x40xf32>
    %51 = arith.subf %4, %50 : vector<16x40xf32>
    %52 = math.exp %51 : vector<16x40xf32>
    %cst_26 = arith.constant dense<0.000000e+00> : vector<16xf32>
    %53 = vector.multi_reduction <add>, %52, %cst_26 [1] : vector<16x40xf32> to vector<16xf32>
    %54 = vector.shape_cast %53 : vector<16xf32> to vector<16x1xf32>
    %c0_27 = arith.constant 0 : index
    %c0_28 = arith.constant 0 : index
    %55 = vector.load %arg8[%c0_27, %c0_28] : memref<16x1xf32, #tpu.memory_space<vmem>>, vector<16x1xf32>
    %56 = arith.maximumf %55, %49 : vector<16x1xf32>
    %c0_29 = arith.constant 0 : index
    %c0_30 = arith.constant 0 : index
    %57 = vector.load %arg9[%c0_29, %c0_30] : memref<16x1xf32, #tpu.memory_space<vmem>>, vector<16x1xf32>
    %c0_31 = arith.constant 0 : index
    %c0_32 = arith.constant 0 : index
    %58 = vector.load %arg8[%c0_31, %c0_32] : memref<16x1xf32, #tpu.memory_space<vmem>>, vector<16x1xf32>
    %59 = arith.subf %58, %56 : vector<16x1xf32>
    %60 = math.exp %59 : vector<16x1xf32>
    %61 = arith.mulf %57, %60 : vector<16x1xf32>
    %62 = arith.subf %49, %56 : vector<16x1xf32>
    %63 = math.exp %62 : vector<16x1xf32>
    %64 = arith.mulf %54, %63 : vector<16x1xf32>
    %65 = arith.addf %61, %64 : vector<16x1xf32>
    %c0_33 = arith.constant 0 : index
    %c0_34 = arith.constant 0 : index
    %66 = vector.load %arg9[%c0_33, %c0_34] : memref<16x1xf32, #tpu.memory_space<vmem>>, vector<16x1xf32>
    tpu.vector_store %arg9[%c0_33, %c0_34], %65 {strides = array<i32>} : memref<16x1xf32, #tpu.memory_space<vmem>>, vector<16x1xf32>,
    %c0_35 = arith.constant 0 : index
    %c0_36 = arith.constant 0 : index
    %67 = vector.load %arg8[%c0_35, %c0_36] : memref<16x1xf32, #tpu.memory_space<vmem>>, vector<16x1xf32>
    tpu.vector_store %arg8[%c0_35, %c0_36], %56 {strides = array<i32>} : memref<16x1xf32, #tpu.memory_space<vmem>>, vector<16x1xf32>,
    %c0_i32_37 = arith.constant 0 : i32
    %68 = arith.cmpi eq, %arg1, %c0_i32_37 : i32
    %69 = arith.extui %68 : i1 to i32
    %c0_i32_38 = arith.constant 0 : i32
    %70 = arith.cmpi ne, %69, %c0_i32_38 : i32
    scf.if %70 {
      %c0_39 = arith.constant 0 : index
      %c0_40 = arith.constant 0 : index
      %71 = vector.load %arg6[%c0_39, %c0_40] : memref<16x1xf32, #tpu.memory_space<vmem>>, vector<16x1xf32>
      %cst_41 = arith.constant 1.05263162 : f32
      %72 = vector.broadcast %cst_41 : f32 to vector<16x1xf32>
      %73 = arith.cmpf olt, %71, %72 : vector<16x1xf32>
      %74 = arith.extui %73 : vector<16x1xi1> to vector<16x1xi32>
      %75 = arith.sitofp %74 : vector<16x1xi32> to vector<16x1xf32>
      %c0_42 = arith.constant 0 : index
      %c0_43 = arith.constant 0 : index
      %76 = vector.load %arg9[%c0_42, %c0_43] : memref<16x1xf32, #tpu.memory_space<vmem>>, vector<16x1xf32>
      %77 = math.log %76 : vector<16x1xf32>
      %c0_44 = arith.constant 0 : index
      %c0_45 = arith.constant 0 : index
      %78 = vector.load %arg8[%c0_44, %c0_45] : memref<16x1xf32, #tpu.memory_space<vmem>>, vector<16x1xf32>
      %79 = arith.addf %77, %78 : vector<16x1xf32>
      %c0_46 = arith.constant 0 : index
      %c0_47 = arith.constant 0 : index
      %80 = vector.load %arg7[%c0_46, %c0_47] : memref<16x1xf32, #tpu.memory_space<vmem>>, vector<16x1xf32>
      %81 = arith.subf %79, %80 : vector<16x1xf32>
      %82 = arith.mulf %81, %75 : vector<16x1xf32>
      %83 = tpu.iota {dimensions = array<i32: 0>} : vector<16x1xi32>
      %c16_i32 = arith.constant 16 : i32
      %84 = arith.muli %arg0, %c16_i32 : i32
      %85 = vector.broadcast %84 : i32 to vector<16x1xi32>
      %86 = arith.addi %85, %83 : vector<16x1xi32>
      %c12_i32 = arith.constant 12 : i32
      %87 = vector.broadcast %c12_i32 : i32 to vector<16x1xi32>
      %88 = arith.cmpi slt, %86, %87 : vector<16x1xi32>
      %cst_48 = arith.constant 0.000000e+00 : f32
      %89 = vector.broadcast %cst_48 : f32 to vector<16x1xf32>
      %90 = arith.select %88, %82, %89 : vector<16x1xi1>, vector<16x1xf32>
      %cst_49 = arith.constant 0.000000e+00 : f32
      %91 = vector.broadcast %cst_49 : f32 to vector<16x1xf32>
      %92 = arith.select %88, %75, %91 : vector<16x1xi1>, vector<16x1xf32>
      %93 = vector.shape_cast %90 : vector<16x1xf32> to vector<1x16x1xf32>
      %cst_50 = arith.constant dense<0.000000e+00> : vector<1xf32>
      %94 = vector.multi_reduction <add>, %93, %cst_50 [1, 2] : vector<1x16x1xf32> to vector<1xf32>
      %95 = vector.shape_cast %94 : vector<1xf32> to vector<1x1x1xf32>
      %96 = vector.extract %95[0, 0, 0] : f32 from vector<1x1x1xf32>
      %c0_51 = arith.constant 0 : index
      %c0_52 = arith.constant 0 : index
      %97 = memref.load %arg4[%c0_51, %c0_52] : memref<2x1xf32, #tpu.memory_space<smem>>
      memref.store %96, %arg4[%c0_51, %c0_52] : memref<2x1xf32, #tpu.memory_space<smem>>
      %98 = vector.shape_cast %92 : vector<16x1xf32> to vector<1x16x1xf32>
      %cst_53 = arith.constant dense<0.000000e+00> : vector<1xf32>
      %99 = vector.multi_reduction <add>, %98, %cst_53 [1, 2] : vector<1x16x1xf32> to vector<1xf32>
      %100 = vector.shape_cast %99 : vector<1xf32> to vector<1x1x1xf32>
      %101 = vector.extract %100[0, 0, 0] : f32 from vector<1x1x1xf32>
      %c1 = arith.constant 1 : index
      %c0_54 = arith.constant 0 : index
      %102 = memref.load %arg4[%c1, %c0_54] : memref<2x1xf32, #tpu.memory_space<smem>>
      memref.store %101, %arg4[%c1, %c0_54] : memref<2x1xf32, #tpu.memory_space<smem>>
    } else {
    }
    return
  }
  func.func @transform_0(%arg0: i32, %arg1: i32) -> (i32, i32) {
    %c0_i32 = arith.constant 0 : i32
    return %arg0, %arg1 : i32, i32
  }
  func.func @transform_1(%arg0: i32, %arg1: i32) -> (i32, i32) {
    %c0_i32 = arith.constant 0 : i32
    return %arg0, %arg1 : i32, i32
  }
  func.func @transform_2(%arg0: i32, %arg1: i32) -> (i32, i32) {
    %c0_i32 = arith.constant 0 : i32
    %c0_i32_0 = arith.constant 0 : i32
    return %c0_i32, %arg0 : i32, i32
  }
}

</mosaic_0001>

<bundles_post_ra>
// kernel: tpu_custom_call.1
= control target key start
LH: loop header
LB: loop body
LE: loop exit
PB: predicated region body
PF: predicated region fallthrough
CT: control target
= control target key end

     0   :  { %7 = vsyncpa [#allocation8], 0  ;;  %s543_s0 = inlined_call_operand.hbm [shape: f32[12,40], index: 0, kind: input, shape index: {}]   ;;  %s544_s1 = inlined_call_operand.hbm [shape: f32[12,40], index: 1, kind: input, shape index: {}]   ;;  %s545_s2 = inlined_call_operand.vmem [shape: f32[2,1], index: 2, kind: output, shape index: {}]  }
   0x1   :  { %8 = vsyncpa [#allocation11], 0 }
   0x2   :  { %9 = vsyncpa [#allocation9], 0  ;;  %s391_s9 = smov [#allocation7]  }
   0x3   :  { %s15_s10 = sshll.u32 %s391_s9, 4  ;;  %s16_s10 = int_to_ptr.vmem [resolvable:$true] %s15_s10 }
   0x4   :  { %s341_s11 = scalar_lea.vmem %s16_s10, 256  ;;  %p346_p1 = scmp.lt.s32.totalorder %s16_s10, %s16_s10 }
   0x5   :  { %p342_p0 = scmp.ne.s32.totalorder %s16_s10, %s341_s11  ;;  %p347_p2 = scmp.lt.s32.totalorder %s341_s11, %s341_s11 }
   0x7   :  { %p348_p3 = por %p347_p2, %p346_p1 }
   0x9   :  { %p349_p4 = pnand %p348_p3, %p342_p0 }
   0xb   :  { %352 = shalt.err (!%p349_p4)
}
   0xc   :  { %s392_s12 = smov 128   ;;  %s393_s13 = smov 8  }
   0xd   :  { %21 = dma.hbm_to_vmem [thread:$0]  %s543_s0, 256, %s16_s10, [#allocation8], %s392_s12, %s392_s12, %s393_s13  }
   0xe   :  { %s394_s16 = smov [#allocation10]  }
   0xf   :  { %s27_s17 = sshll.u32 %s394_s16, 4  ;;  %s28_s17 = int_to_ptr.vmem [resolvable:$true] %s27_s17 }
  0x10   :  { %s361_s18 = scalar_lea.vmem %s28_s17, 256  ;;  %p366_p6 = scmp.lt.s32.totalorder %s28_s17, %s28_s17 }
  0x11   :  { %p362_p5 = scmp.ne.s32.totalorder %s28_s17, %s361_s18  ;;  %p367_p7 = scmp.lt.s32.totalorder %s361_s18, %s361_s18 }
  0x13   :  { %p368_p8 = por %p367_p7, %p366_p6 }
  0x15   :  { %p369_p9 = pnand %p368_p8, %p362_p5 }
  0x17   :  { %372 = shalt.err (!%p369_p9)
}
  0x18   :  { %33 = dma.hbm_to_vmem [thread:$0]  %s544_s1, 256, %s28_s17, [#allocation11], %s392_s12, %s392_s12, %s393_s13  }
  0x19   :  { %385 = dma.done.wait [#allocation8], 256  }
  0x1a   :  { %386 = vsyncadd [#allocation8], 4294967040 }
  0x1b   :  { %387 = dma.done.wait [#allocation11], 256  }
  0x1c   :  { %388 = vsyncadd [#allocation11], 4294967040  ;;  %vm44_vm0 = vcmask 7168   ;;  %v395_v0 = vmov -inf   ;;  %vm61_vm1 = vcmask 326656   ;;  %v60_v1 = vld [vmem:[#allocation10 + $0x8] sm:$0xff]  ;;  %v55_v8 = vlaneseq }
  0x1d   :  { %46 = vst.msk [vmem:[#allocation2 + $0x8] sm:$0xff] %vm44_vm0, %v395_v0  ;;  %45 = vst.msk [vmem:[#allocation2] sm:$0xff] %vm44_vm0, %v395_v0  ;;  %v423_v2 = vld [vmem:[#allocation10] sm:$0xff]  ;;  %v65_v3 = vsel %vm61_vm1, %v60_v1, -inf  ;;  %v428_v5 = vld [vmem:[#allocation7 + $0x8] sm:$0xff]  ;;  %v396_v7 = vmov 0.0  }
  0x1e   :  { %51 = vst.msk [vmem:[#allocation5] sm:$0xff] %vm44_vm0, %v395_v0  ;;  %52 = vst.msk [vmem:[#allocation5 + $0x8] sm:$0xff] %vm44_vm0, %v395_v0  ;;  %66 = vmax.xlane.f32.xlu0 %v65_v3  ;;  %v62_v4 = vsel %vm61_vm1, %v423_v2, -inf  ;;  %v164_v6 = vsel %vm61_vm1, %v428_v5, -inf  ;;  %v447_v10 = vand.u32 127, %v55_v8  ;;  %v486_v31 = vld [vmem:[#allocation7] sm:$0xff] }
  0x1f   :  { %54 = vst.msk [vmem:[#allocation6 + $0x8] sm:$0xff] %vm44_vm0, %v396_v7  ;;  %47 = vst.msk [vmem:[#allocation3] sm:$0xff] %vm44_vm0, %v396_v7  ;;  %v161_v33 = vsel %vm61_vm1, %v486_v31, -inf  ;;  %s281_s21 = sshll.u32 %s545_s2, 4  ;;  %s282_s21 = int_to_ptr.vmem [resolvable:$true] %s281_s21 }
  0x20   :  { %48 = vst.msk [vmem:[#allocation3 + $0x8] sm:$0xff] %vm44_vm0, %v396_v7  ;;  %49 = vst.msk [vmem:[#allocation4] sm:$0xff] %vm44_vm0, %v396_v7  ;;  %s373_s24 = scalar_lea.vmem %s282_s21, 32  ;;  %p378_p11 = scmp.lt.s32.totalorder %s282_s21, %s282_s21 }
  0x21   :  { %50 = vst.msk [vmem:[#allocation4 + $0x8] sm:$0xff] %vm44_vm0, %v396_v7  ;;  %53 = vst.msk [vmem:[#allocation6] sm:$0xff] %vm44_vm0, %v396_v7  ;;  %p374_p10 = scmp.ne.s32.totalorder %s282_s21, %s373_s24  ;;  %p379_p12 = scmp.lt.s32.totalorder %s373_s24, %s373_s24 }
  0x22   :  { %63 = vmax.xlane.f32.xlu0 %v62_v4 }
  0x23   :  { %p380_p13 = por %p379_p12, %p378_p11 }
  0x24   :  { %v444_v9 = vld [vmem:[#allocation2 + $0x8] sm:$0xff]  ;;  %v465_v16 = vld [vmem:[#allocation2] sm:$0xff] }
  0x25   :  { %v180_v22 = vld [vmem:[#allocation5 + $0x8] sm:$0xff]  ;;  %v179_v49 = vld [vmem:[#allocation5] sm:$0xff]  ;;  %p381_p0 = pnand %p380_p13, %p374_p10 }
  0x26   :  { %165 = vmax.xlane.f32.xlu0 %v164_v6 }
  0xa7   :  { %v449_v11 = vpop.xlane.xlu0 %66 }
  0xa8   :  { %v453_v12 = vmax.f32 %v444_v9, %v449_v11  ;;  %vm81_vm2 = vcmp.eq.f32.partialorder %v60_v1, %v449_v11  ;;  %vm127_vm3 = vcmp.gt.f32.partialorder %v449_v11, %v444_v9  ;;  %v69_v36 = vsub.f32 %v60_v1, %v449_v11 }
  0xa9   :  { %v83_v13 = vsel %vm81_vm2, %v447_v10, 40 }
  0xaa   :  { %v133_v14 = vsub.f32 %v444_v9, %v453_v12  ;;  %v141_v15 = vsub.f32 %v449_v11, %v453_v12  ;;  %154 = vst.msk [vmem:[#allocation2 + $0x8] sm:$0xff] %vm44_vm0, %v453_v12  ;;  %v99_v17 = vsel %vm61_vm1, %v83_v13, 2147483647  ;;  %v72_v37 = vmul.f32 1.442695, %v69_v36 }
  0xab   :  { %v468_v18 = vpop.xlane.xlu0 %63  ;;  %v101_v19 = vshra.s32 %v99_v17, 16  ;;  %v100_v38 = vand.u32 65535, %v99_v17 }
  0xac   :  { %v472_v20 = vmax.f32 %v465_v16, %v468_v18  ;;  %vm80_vm4 = vcmp.eq.f32.partialorder %v423_v2, %v468_v18  ;;  %vm126_vm5 = vcmp.gt.f32.partialorder %v468_v18, %v465_v16  ;;  %v68_v50 = vsub.f32 %v423_v2, %v468_v18 }
  0xad   :  { %v103_v21 = vcvt.s32.f32 %v101_v19  ;;  %v82_v23 = vsel %vm80_vm4, %v447_v10, 40  ;;  %v102_v40 = vcvt.s32.f32 %v100_v38  ;;  %v136_v1 = vmul.f32 1.442695, %v133_v14 }
  0xae   :  { %v132_v24 = vsub.f32 %v465_v16, %v472_v20  ;;  %v140_v25 = vsub.f32 %v468_v18, %v472_v20  ;;  %153 = vst.msk [vmem:[#allocation2] sm:$0xff] %vm44_vm0, %v472_v20  ;;  %v84_v26 = vsel %vm61_vm1, %v82_v23, 2147483647  ;;  %v70_v55 = vmul.f32 1.442695, %v68_v50 }
  0xaf   :  { %104 = vmin.xlane.f32.xlu1 %v103_v21  ;;  %v166_v27 = vpop.xlane.xlu0 %165  ;;  %v86_v28 = vshra.s32 %v84_v26, 16  ;;  %v85_v42 = vand.u32 65535, %v84_v26  ;;  %v144_v2 = vmul.f32 1.442695, %v141_v15 }
  0xb0   :  { %v182_v29 = vmax.f32 %v180_v22, %v166_v27  ;;  %v168_v34 = vsub.f32 %v428_v5, %v166_v27 }
  0xb1   :  { %v88_v30 = vcvt.s32.f32 %v86_v28  ;;  %v87_v46 = vcvt.s32.f32 %v85_v42 }
  0xb2   :  { %v186_v32 = vsub.f32 %v180_v22, %v182_v29  ;;  %206 = vst.msk [vmem:[#allocation5 + $0x8] sm:$0xff] %vm44_vm0, %v182_v29  ;;  %v171_v35 = vmul.f32 1.442695, %v168_v34  ;;  %v194_v62 = vsub.f32 %v166_v27, %v182_v29 }
  0xb3   :  { %89 = vmin.xlane.f32.xlu1 %v88_v30 }
  0xb4   :  { %305 = vpow2.f32 %v171_v35  ;;  %v189_v63 = vmul.f32 1.442695, %v186_v32  ;;  %v197_v0 = vmul.f32 1.442695, %v194_v62 }
  0xb5   :  { %307 = vpow2.f32 %v72_v37 }
  0xb7   :  { %162 = vmax.xlane.f32.xlu1 %v161_v33  ;;  %v131_v33 = vld [vmem:[#allocation3 + $0x8] sm:$0xff] }
  0xc1   :  { %v306_v41 = vpop.eup %305 }
  0xc2   :  { %v176_v44 = vsel %vm61_vm1, %v306_v41, 0.0  ;;  %v308_v47 = vpop.eup %307 }
  0xc3   :  { %v77_v54 = vsel %vm61_vm1, %v308_v47, 0.0  ;;  %v183_v47 = vld [vmem:[#allocation6] sm:$0xff] }
 0x138   :  { %v105_v39 = vpop.xlane.xlu1 %104 }
 0x139   :  { %vm106_vm6 = vcmp.eq.f32.partialorder %v103_v21, %v105_v39  ;;  %v111_v3 = vcvt.f32.s32 %v105_v39  ;;  %v184_v21 = vld [vmem:[#allocation6 + $0x8] sm:$0xff] }
 0x13a   :  { %v107_v43 = vsel %vm106_vm6, %v102_v40, inf }
 0x13b   :  { %108 = vmin.xlane.f32.xlu0 %v107_v43  ;;  %v112_v6 = vshll.u32 %v111_v3, 16  ;;  %v156_v3 = vld [vmem:[#allocation4 + $0x8] sm:$0xff] }
 0x13c   :  { %v90_v45 = vpop.xlane.xlu1 %89 }
 0x13d   :  { %vm91_vm7 = vcmp.eq.f32.partialorder %v88_v30, %v90_v45  ;;  %v96_v19 = vcvt.f32.s32 %v90_v45 }
 0x13e   :  { %v92_v48 = vsel %vm91_vm7, %v87_v46, inf  ;;  %v142_v46 = vmul.f32 1.442695, %v140_v25 }
 0x13f   :  { %177 = vadd.xlane.f32.xlu0 %v176_v44  ;;  %93 = vmin.xlane.f32.xlu1 %v92_v48  ;;  %v97_v15 = vshll.u32 %v96_v19, 16 }
 0x140   :  { %v163_v51 = vpop.xlane.xlu1 %162 }
 0x141   :  { %v167_v52 = vsub.f32 %v486_v31, %v163_v51  ;;  %v181_v53 = vmax.f32 %v179_v49, %v163_v51 }
 0x143   :  { %78 = vadd.xlane.f32.xlu0 %v77_v54  ;;  %v169_v56 = vmul.f32 1.442695, %v167_v52  ;;  %v185_v57 = vsub.f32 %v179_v49, %v181_v53  ;;  %205 = vst.msk [vmem:[#allocation5] sm:$0xff] %vm44_vm0, %v181_v53  ;;  %v193_v27 = vsub.f32 %v163_v51, %v181_v53 }
 0x145   :  { %309 = vpow2.f32 %v169_v56  ;;  %v187_v34 = vmul.f32 1.442695, %v185_v57  ;;  %v195_v40 = vmul.f32 1.442695, %v193_v27 }
 0x146   :  { %311 = vpow2.f32 %v70_v55  ;;  %v235_v55 = vshrl.u32 %v55_v8, 7 }
 0x147   :  { %313 = vpow2.f32 %v189_v63 }
 0x148   :  { %315 = vpow2.f32 %v197_v0 }
 0x149   :  { %317 = vpow2.f32 %v136_v1 }
 0x14a   :  { %319 = vpow2.f32 %v144_v2 }
 0x14b   :  { %321 = vpow2.f32 %v187_v34 }
 0x14c   :  { %323 = vpow2.f32 %v195_v40 }
 0x152   :  { %v310_v58 = vpop.eup %309 }
 0x153   :  { %v173_v59 = vsel %vm61_vm1, %v310_v58, 0.0  ;;  %v312_v60 = vpop.eup %311  ;;  %v236_v58 = vadd.s32 8, %v235_v55 }
 0x154   :  { %174 = vadd.xlane.f32.xlu1 %v173_v59  ;;  %v74_v61 = vsel %vm61_vm1, %v312_v60, 0.0  ;;  %v314_v17 = vpop.eup %313 }
 0x155   :  { %v316_v23 = vpop.eup %315  ;;  %v192_v14 = vmul.f32 %v314_v17, %v184_v21  ;;  %vm242_vm11 = vcmp.lt.s32.totalorder %v236_v58, 12 }
 0x156   :  { %v318_v12 = vpop.eup %317 }
 0x157   :  { %v320_v37 = vpop.eup %319  ;;  %v139_v41 = vmul.f32 %v318_v12, %v131_v33 }
 0x158   :  { %75 = vadd.xlane.f32.xlu1 %v74_v61 }
 0x1c4   :  { %v109_v4 = vpop.xlane.xlu0 %108 }
 0x1c5   :  { %v110_v13 = vcvt.f32.s32 %v109_v4 }
 0x1c7   :  { %v113_v22 = vadd.s32 %v112_v6, %v110_v13 }
 0x1c8   :  { %v178_v26 = vpop.xlane.xlu0 %177  ;;  %v94_v29 = vpop.xlane.xlu1 %93 }
 0x1c9   :  { %v200_v28 = vmul.f32 %v316_v23, %v178_v26  ;;  %vm115_vm8 = vcmp.eq.s32.totalorder %v447_v10, %v113_v22  ;;  %v95_v30 = vcvt.f32.s32 %v94_v29  ;;  %v225_v23 = vld [vmem:[#allocation5 + $0x8] sm:$0xff]  ;;  %v224_v29 = vld [vmem:[#allocation5] sm:$0xff] }
 0x1ca   :  { %v117_v32 = vsel %vm115_vm8, %v428_v5, 0.0  ;;  %v134_v5 = vmul.f32 1.442695, %v132_v24 }
 0x1cb   :  { %v202_v35 = vadd.f32 %v200_v28, %v192_v14  ;;  %v121_v36 = vsel %vm61_vm1, %v117_v32, 0.0  ;;  %v98_v38 = vadd.s32 %v97_v15, %v95_v30 }
 0x1cc   :  { %122 = vadd.xlane.f32.xlu0 %v121_v36  ;;  %v79_v39 = vpop.xlane.xlu0 %78  ;;  %325 = vpow2.f32 %v134_v5 }
 0x1cd   :  { %204 = vst.msk [vmem:[#allocation6 + $0x8] sm:$0xff] %vm44_vm0, %v202_v35  ;;  %v147_v42 = vmul.f32 %v320_v37, %v79_v39  ;;  %vm114_vm9 = vcmp.eq.s32.totalorder %v447_v10, %v98_v38  ;;  %327 = vpow2.f32 %v142_v46  ;;  %v322_v10 = vpop.eup %321 }
 0x1ce   :  { %v116_v44 = vsel %vm114_vm9, %v486_v31, 0.0  ;;  %v324_v48 = vpop.eup %323  ;;  %v191_v49 = vmul.f32 %v322_v10, %v183_v47  ;;  %v130_v31 = vld [vmem:[#allocation3] sm:$0xff] }
 0x1cf   :  { %v149_v43 = vadd.f32 %v147_v42, %v139_v41  ;;  %v118_v45 = vsel %vm61_vm1, %v116_v44, 0.0 }
 0x1d0   :  { %119 = vadd.xlane.f32.xlu1 %v118_v45 }
 0x1d1   :  { %152 = vst.msk [vmem:[#allocation3 + $0x8] sm:$0xff] %vm44_vm0, %v149_v43 }
 0x1d4   :  { %v219_v1 = vld [vmem:[#allocation6 + $0x8] sm:$0xff] }
 0x1d5   :  { %329 = vlog2.f32 %v219_v1 }
 0x1d8   :  { %v211_v57 = vld [vmem:[#allocation3 + $0x8] sm:$0xff] }
 0x1d9   :  { %v326_v51 = vpop.eup %325  ;;  %vm213_vm10 = vcmp.lt.f32.partialorder %v211_v57, 1.0526316 }
 0x1da   :  { %v328_v53 = vpop.eup %327  ;;  %v138_v20 = vmul.f32 %v326_v51, %v130_v31  ;;  %v293_v59 = vsel %vm213_vm10, 1.0, %v396_v7 }
 0x1db   :  { %v246_v61 = vsel %vm242_vm11, %v293_v59, 0.0 }
 0x1dc   :  { %v262_v0 = vsel %vm44_vm0, %v246_v61, 0.0 }
 0x1dd   :  { %v175_v24 = vpop.xlane.xlu1 %174 }
 0x1de   :  { %v199_v50 = vmul.f32 %v324_v48, %v175_v24 }
 0x1e0   :  { %v201_v52 = vadd.f32 %v199_v50, %v191_v49 }
 0x1e1   :  { %v76_v54 = vpop.xlane.xlu1 %75 }
 0x1e2   :  { %203 = vst.msk [vmem:[#allocation6] sm:$0xff] %vm44_vm0, %v201_v52  ;;  %v146_v25 = vmul.f32 %v328_v53, %v76_v54  ;;  %v330_v6 = vpop.eup %329 }
 0x1e3   :  { %v223_v17 = vmul.f32 0.6931472, %v330_v6 }
 0x1e4   :  { %v148_v56 = vadd.f32 %v146_v25, %v138_v20 }
 0x1e5   :  { %v227_v26 = vadd.f32 %v225_v23, %v223_v17 }
 0x1e6   :  { %151 = vst.msk [vmem:[#allocation3] sm:$0xff] %vm44_vm0, %v148_v56 }
 0x1e9   :  { %v218_v2 = vld [vmem:[#allocation6] sm:$0xff] }
 0x1ea   :  { %331 = vlog2.f32 %v218_v2 }
 0x1ed   :  { %v210_v60 = vld [vmem:[#allocation3] sm:$0xff] }
 0x1ee   :  { %vm212_vm12 = vcmp.lt.f32.partialorder %v210_v60, 1.0526316 }
 0x1ef   :  { %v292_v62 = vsel %vm212_vm12, 1.0, %v396_v7  ;;  %v155_v7 = vld [vmem:[#allocation4] sm:$0xff] }
 0x1f0   :  { %v261_v63 = vsel %vm44_vm0, %v292_v62, 0.0 }
 0x1f1   :  { %v263_v8 = vadd.f32 %v262_v0, %v261_v63 }
 0x1f3   :  { %264 = vadd.xlane.f32.xlu1 %v263_v8 }
 0x1f7   :  { %v332_v21 = vpop.eup %331 }
 0x1f8   :  { %v221_v27 = vmul.f32 0.6931472, %v332_v21 }
 0x1fa   :  { %v226_v11 = vadd.f32 %v224_v29, %v221_v27 }
 0x255   :  { %v123_v4 = vpop.xlane.xlu0 %122 }
 0x256   :  { %v158_v13 = vsel %vm127_vm3, %v123_v4, %v156_v3 }
 0x257   :  { %160 = vst.msk [vmem:[#allocation4 + $0x8] sm:$0xff] %vm44_vm0, %v158_v13 }
 0x259   :  { %v120_v19 = vpop.xlane.xlu1 %119 }
 0x25a   :  { %v157_v22 = vsel %vm126_vm5, %v120_v19, %v155_v7 }
 0x25b   :  { %159 = vst.msk [vmem:[#allocation4] sm:$0xff] %vm44_vm0, %v157_v22 }
 0x25e   :  { %v229_v14 = vld [vmem:[#allocation4 + $0x8] sm:$0xff] }
 0x25f   :  { %v231_v28 = vsub.f32 %v227_v26, %v229_v14 }
 0x261   :  { %v233_v9 = vmul.f32 %v293_v59, %v231_v28 }
 0x262   :  { %v228_v12 = vld [vmem:[#allocation4] sm:$0xff] }
 0x263   :  { %v230_v15 = vsub.f32 %v226_v11, %v228_v12  ;;  %v244_v30 = vsel %vm242_vm11, %v233_v9, 0.0 }
 0x264   :  { %v248_v16 = vsel %vm44_vm0, %v244_v30, 0.0 }
 0x265   :  { %v232_v32 = vmul.f32 %v292_v62, %v230_v15 }
 0x267   :  { %v247_v33 = vsel %vm44_vm0, %v232_v32, 0.0 }
 0x268   :  { %v249_v18 = vadd.f32 %v248_v16, %v247_v33 }
 0x26a   :  { %250 = vadd.xlane.f32.xlu0 %v249_v18 }
 0x27c   :  { %v265_v34 = vpop.xlane.xlu1 %264 }
 0x27d   :  { %v266_v35 = vrot.slane %v265_v34, 4 }
 0x27f   :  { %v267_v36 = vadd.f32 %v266_v35, %v265_v34 }
 0x281   :  { %v268_v37 = vrot.slane %v267_v36, 2 }
 0x283   :  { %v269_v41 = vadd.f32 %v268_v37, %v267_v36 }
 0x285   :  { %v270_v43 = vrot.slane %v269_v41, 1 }
 0x287   :  { %v271_v46 = vadd.f32 %v270_v43, %v269_v41 }
 0x2f3   :  { %v251_v38 = vpop.xlane.xlu0 %250 }
 0x2f4   :  { %v252_v39 = vrot.slane %v251_v38, 4 }
 0x2f6   :  { %v253_v40 = vadd.f32 %v252_v39, %v251_v38 }
 0x2f8   :  { %v254_v42 = vrot.slane %v253_v40, 2 }
 0x2fa   :  { %v255_v5 = vadd.f32 %v254_v42, %v253_v40 }
 0x2fc   :  { %v256_v44 = vrot.slane %v255_v5, 1 }
 0x2fe   :  { %v257_v45 = vadd.f32 %v256_v44, %v255_v5 }
 0x300   :  { %294 = vpush %v257_v45 }
 0x301   :  { %296 = vpush %v271_v46 }
 0x331   :  { %s295_s22 = spop %294 }
 0x332   :  { %260 = sst [smem:[#allocation12]] %s295_s22  ;;  %s297_s23 = spop %296 }
 0x333   :  { %274 = sst [smem:[#allocation12 + $0x80]] %s297_s23 }
 0x334   :  { %384 = shalt.err (!%p381_p0)
}
 0x335   :  { %s397_s25 = smov [#allocation12]  }
 0x336   :  { %284 = dma.smem_to_vmem %s397_s25, 32, %s282_s21, [#allocation9]  }
 0x337   :  { %389 = dma.done.wait [#allocation9], 32  }
 0x338   :  { %390 = vsyncadd [#allocation9], 4294967264 }
 0x339   :  { %288 = sfence }
 0x33a   :  { %289 = vsyncpa [#allocation8], 1 }
 0x33b   :  { %290 = vsyncpa [#allocation11], 1 }
 0x33c   :  { %291 = vsyncpa [#allocation9], 1 }

</bundles_post_ra>
